<compile_context>
chip_gen: v7x
topology: tpu7x:2x2x1
jax: 0.10.0
libtpu: 0.0.40
codegen_flags: <defaults>
</compile_context>

<pallas_src>
import math

import jax
import jax.numpy as jnp
from jax.experimental import pallas as pl
from jax.experimental.pallas import tpu as pltpu


def _make_stats_kernel(tn: int, steps: int, n_rows: int):
    """Streaming per-column sufficient statistics.

    coef_ref : (tn, D) slab of coef rows, D = C*H (lane-dense when D % 128 == 0)
    acc_ref  : (1, 2, D) resident accumulator (one block per parallel core):
                 acc[0, 0, d] += sum_rows ln|coef|
                 acc[0, 1, d] += sum_rows ln^2|coef|
    """

    def kernel(coef_ref, acc_ref):
        c = pl.program_id(0)          # core index        ("parallel")
        k = pl.program_id(1)          # block within core ("arbitrary", reduction)

        @pl.when(k == 0)
        def _():
            acc_ref[...] = jnp.zeros_like(acc_ref)

        # Natural log; /ln(10) folded into the JAX finalize.
        l = jnp.log(jnp.abs(coef_ref[...]))                        # (tn, D)

        row0 = (c * steps + k) * tn                                # global first row
        remaining = n_rows - row0                                  # valid rows here

        @pl.when(remaining >= tn)                                  # full block: no mask
        def _():
            acc_ref[:, 0:1, :] += jnp.sum(l, axis=0, keepdims=True)[None]
            acc_ref[:, 1:2, :] += jnp.sum(l * l, axis=0, keepdims=True)[None]

        @pl.when(remaining < tn)                                   # tail / OOB block
        def _():
            rows = jax.lax.broadcasted_iota(jnp.int32, l.shape, 0)
            lm = jnp.where(rows < remaining, l, 0.0)               # drop padded rows
            acc_ref[:, 0:1, :] += jnp.sum(lm, axis=0, keepdims=True)[None]
            acc_ref[:, 1:2, :] += jnp.sum(lm * lm, axis=0, keepdims=True)[None]

    return kernel


def _chip_defaults():
    """Returns (use 2-TensorCore split?, target bytes per coef block)."""
    try:
        kind = jax.devices()[0].device_kind.lower()
    except Exception:
        kind = ""
    two_core = any(t in kind for t in ("v4", "v5p", "v7", "7x"))
    if any(t in kind for t in ("v4", "v5p", "v6", "v7", "7x")):
        block_bytes = 8 << 20          # 32 MiB scoped-VMEM default -> 2x8 MiB fits
    else:
        block_bytes = 3 << 20          # v5e / unknown: 16 MiB scoped-VMEM default
    return two_core, block_bytes


def regression_loss(s, coef, x, weight, n_channels, n_dofs, *,
                    block_rows=None, n_cores=None):
    """Pallas implementation of RegressionLoss.forward(s, coef)."""
    C, H = int(n_channels), int(n_dofs)
    D = C * H

    # (anything, C, H) -> (N, C*H); row-major so column c*H + h == (c, h).
    coef2 = jnp.asarray(coef, jnp.float32).reshape(-1, D)
    N = int(coef2.shape[0])

    x = jnp.asarray(x, jnp.float32)
    weight = jnp.asarray(weight, jnp.float32)
    s_b = jnp.broadcast_to(jnp.asarray(s, jnp.float32), (C,))     # s.ndim in {0, 1}

    two_core, block_bytes = _chip_defaults()

    # ---- tiling: large lane-dense row blocks ----
    bytes_per_row = D * 4
    if block_rows is not None:
        target_tn = max(1, int(block_rows))
    else:
        target_tn = max(8, block_bytes // bytes_per_row)
    if N <= target_tn:
        tn = N                                      # single full block (full-dim ok)
    else:
        tn = max(8, (target_tn // 8) * 8)           # (8, 128) sublane constraint

    n_blocks = -(-N // tn)                          # cdiv

    if n_cores is None:
        n_cores = 2 if two_core else 1
    n_cores = max(1, min(int(n_cores), n_blocks))
    steps = -(-n_blocks // n_cores)                 # blocks per core

    acc = pl.pallas_call(
        _make_stats_kernel(tn, steps, N),
        out_shape=jax.ShapeDtypeStruct((n_cores, 2, D), jnp.float32),
        grid=(n_cores, steps),
        in_specs=[
            # Clamp so the (rare) extra step of the multi-core split never indexes
            # past the array; that step is fully row-masked inside the kernel.
            pl.BlockSpec(
                (tn, D),
                lambda c, k: (jnp.minimum(c * steps + k, n_blocks - 1), 0)),
        ],
        out_specs=pl.BlockSpec((1, 2, D), lambda c, k: (c, 0, 0)),
        compiler_params=pltpu.CompilerParams(
            dimension_semantics=("parallel", "arbitrary")),
    )(coef2)

    # ---- tiny (C*H)-sized finalize in plain JAX ----
    inv_ln10 = 1.0 / math.log(10.0)
    A0 = (jnp.sum(acc[:, 0, :], axis=0) * inv_ln10).reshape(C, H)             # sum lc
    A1 = (jnp.sum(acc[:, 1, :], axis=0) * (inv_ln10 * inv_ln10)).reshape(C, H)  # sum lc^2

    mean_x = jnp.mean(x)
    mean_y = jnp.sum(A0, axis=1) / float(N * H)                               # (C,)
    pred = -s_b[:, None] * (x - mean_x)[None, :] + mean_y[:, None]            # (C, H)

    # sum_n (lc - pred)^2 per column = A1 - 2*pred*A0 + N*pred^2
    per_col = A1 - 2.0 * pred * A0 + float(N) * (pred * pred)                 # (C, H)
    return jnp.sum(per_col * weight[None, :]) / float(N * C)


def _reference_loss(s, coef, x, weight, C, H):
    """Pure-JAX reference mirroring the PyTorch forward."""
    lc = jnp.log10(jnp.abs(jnp.asarray(coef, jnp.float32))).reshape(-1, C, H)
    mean_x = x.mean()
    mean_y = lc.mean(axis=(0, 2))
    s1 = jnp.broadcast_to(jnp.asarray(s, jnp.float32), (C,))
    pred = -s1[:, None] * (x - mean_x)[None, :] + mean_y[:, None]
    loss = (lc - pred[None, :, :]) ** 2
    loss = jnp.einsum("nch,h->nc", loss, weight)
    return loss.mean()


if __name__ == "__main__":
    n_dofs = 32       # H
    n_channels = 4    # C
    batch = 2         # N

    key = jax.random.PRNGKey(0)
    k_w, k_coef, k_s = jax.random.split(key, 3)

    # RegressionLoss.reset(w): x = log10(w); weight = 1/(w*ln10), normalized
    # (enable_weight=True path).
    w = jax.random.uniform(k_w, (n_dofs,), jnp.float32, minval=0.5, maxval=2.0)
    x_buf = jnp.log10(w)
    weight_buf = 1.0 / (w * math.log(10.0))
    weight_buf = weight_buf / jnp.sum(weight_buf)

    coef = jax.random.uniform(
        k_coef, (batch, n_channels, n_dofs), jnp.float32, minval=0.1, maxval=3.0)
    s = jax.random.uniform(k_s, (n_channels,), jnp.float32, minval=0.1, maxval=2.0)

    out = regression_loss(s, coef, x_buf, weight_buf, n_channels, n_dofs)
    out = jax.block_until_ready(out)
    ref = _reference_loss(s, coef, x_buf, weight_buf, n_channels, n_dofs)
    assert jnp.allclose(out, ref, rtol=1e-4, atol=1e-4), (out, ref)

    # Second check: multi-block streaming, forced 2-core split (correct on any
    # chip), partial last block (37 % 8 != 0 -> in-kernel row mask) and the
    # clamped, fully-masked extra block of the uneven core split.
    batch2 = 37
    coef_b = jax.random.uniform(
        jax.random.PRNGKey(1), (batch2, n_channels, n_dofs),
        jnp.float32, minval=0.1, maxval=3.0)
    out2 = regression_loss(s, coef_b, x_buf, weight_buf, n_channels, n_dofs,
                           block_rows=8, n_cores=2)
    out2 = jax.block_until_ready(out2)
    ref2 = _reference_loss(s, coef_b, x_buf, weight_buf, n_channels, n_dofs)
    assert jnp.allclose(out2, ref2, rtol=1e-4, atol=1e-4), (out2, ref2)

    print("KERNEL_OK")
</pallas_src>

<mosaic_0001>
module attributes {stable_mosaic.version = 11 : i64} {
  func.func @kernel(%arg0: i32, %arg1: i32, %arg2: memref<2x128xf32, #tpu.memory_space<vmem>>, %arg3: memref<1x2x128xf32, #tpu.memory_space<vmem>>) attributes {dimension_semantics = [#tpu.dimension_semantics<parallel>, #tpu.dimension_semantics<arbitrary>], iteration_bounds = array<i64: 1, 1>, scalar_prefetch = 0 : i64, scratch_operands = 0 : i64, tpu.core_type = #tpu.core_type<tc>, window_params = [{transform_indices = @transform_0, window_bounds = array<i64: 2, 128>}, {transform_indices = @transform_1, window_bounds = array<i64: 1, 2, 128>}]} {
    %c0_i32 = arith.constant 0 : i32
    %0 = arith.cmpi eq, %arg1, %c0_i32 : i32
    %1 = arith.extui %0 : i1 to i32
    %c0_i32_0 = arith.constant 0 : i32
    %2 = arith.cmpi ne, %1, %c0_i32_0 : i32
    scf.if %2 {
      %cst = arith.constant 0.000000e+00 : f32
      %16 = vector.broadcast %cst : f32 to vector<1x2x128xf32>
      %c0_7 = arith.constant 0 : index
      %c0_8 = arith.constant 0 : index
      %c0_9 = arith.constant 0 : index
      %17 = vector.load %arg3[%c0_7, %c0_8, %c0_9] : memref<1x2x128xf32, #tpu.memory_space<vmem>>, vector<1x2x128xf32>
      tpu.vector_store %arg3[%c0_7, %c0_8, %c0_9], %16 {strides = array<i32>} : memref<1x2x128xf32, #tpu.memory_space<vmem>>, vector<1x2x128xf32>,
    } else {
    }
    %c0 = arith.constant 0 : index
    %c0_1 = arith.constant 0 : index
    %3 = vector.load %arg2[%c0, %c0_1] : memref<2x128xf32, #tpu.memory_space<vmem>>, vector<2x128xf32>
    %4 = math.absf %3 : vector<2x128xf32>
    %5 = math.log %4 : vector<2x128xf32>
    %c1_i32 = arith.constant 1 : i32
    %6 = arith.muli %arg0, %c1_i32 : i32
    %7 = arith.addi %6, %arg1 : i32
    %c2_i32 = arith.constant 2 : i32
    %8 = arith.muli %7, %c2_i32 : i32
    %c2_i32_2 = arith.constant 2 : i32
    %9 = arith.subi %c2_i32_2, %8 : i32
    %c2_i32_3 = arith.constant 2 : i32
    %10 = arith.cmpi sge, %9, %c2_i32_3 : i32
    %11 = arith.extui %10 : i1 to i32
    %c0_i32_4 = arith.constant 0 : i32
    %12 = arith.cmpi ne, %11, %c0_i32_4 : i32
    scf.if %12 {
      %c0_7 = arith.constant 0 : index
      %c0_8 = arith.constant 0 : index
      %c0_9 = arith.constant 0 : index
      %16 = vector.load %arg3[%c0_7, %c0_8, %c0_9] : memref<1x2x128xf32, #tpu.memory_space<vmem>>, vector<1x1x128xf32>
      %cst = arith.constant dense<0.000000e+00> : vector<128xf32>
      %17 = vector.multi_reduction <add>, %5, %cst [0] : vector<2x128xf32> to vector<128xf32>
      %18 = vector.shape_cast %17 : vector<128xf32> to vector<1x128xf32>
      %19 = vector.shape_cast %18 : vector<1x128xf32> to vector<1x1x128xf32>
      %20 = arith.addf %16, %19 : vector<1x1x128xf32>
      %c0_10 = arith.constant 0 : index
      %c0_11 = arith.constant 0 : index
      %c0_12 = arith.constant 0 : index
      %21 = vector.load %arg3[%c0_10, %c0_11, %c0_12] : memref<1x2x128xf32, #tpu.memory_space<vmem>>, vector<1x1x128xf32>
      tpu.vector_store %arg3[%c0_10, %c0_11, %c0_12], %20 {strides = array<i32>} : memref<1x2x128xf32, #tpu.memory_space<vmem>>, vector<1x1x128xf32>,
      %c0_13 = arith.constant 0 : index
      %c1 = arith.constant 1 : index
      %c0_14 = arith.constant 0 : index
      %22 = vector.load %arg3[%c0_13, %c1, %c0_14] : memref<1x2x128xf32, #tpu.memory_space<vmem>>, vector<1x1x128xf32>
      %23 = arith.mulf %5, %5 : vector<2x128xf32>
      %cst_15 = arith.constant dense<0.000000e+00> : vector<128xf32>
      %24 = vector.multi_reduction <add>, %23, %cst_15 [0] : vector<2x128xf32> to vector<128xf32>
      %25 = vector.shape_cast %24 : vector<128xf32> to vector<1x128xf32>
      %26 = vector.shape_cast %25 : vector<1x128xf32> to vector<1x1x128xf32>
      %27 = arith.addf %22, %26 : vector<1x1x128xf32>
      %c0_16 = arith.constant 0 : index
      %c1_17 = arith.constant 1 : index
      %c0_18 = arith.constant 0 : index
      %28 = vector.load %arg3[%c0_16, %c1_17, %c0_18] : memref<1x2x128xf32, #tpu.memory_space<vmem>>, vector<1x1x128xf32>
      tpu.vector_store %arg3[%c0_16, %c1_17, %c0_18], %27 {strides = array<i32>} : memref<1x2x128xf32, #tpu.memory_space<vmem>>, vector<1x1x128xf32>,
    } else {
    }
    %c2_i32_5 = arith.constant 2 : i32
    %13 = arith.cmpi slt, %9, %c2_i32_5 : i32
    %14 = arith.extui %13 : i1 to i32
    %c0_i32_6 = arith.constant 0 : i32
    %15 = arith.cmpi ne, %14, %c0_i32_6 : i32
    scf.if %15 {
      %16 = tpu.iota {dimensions = array<i32: 0>} : vector<2x128xi32>
      %17 = vector.broadcast %9 : i32 to vector<2x128xi32>
      %18 = arith.cmpi slt, %16, %17 : vector<2x128xi32>
      %cst = arith.constant 0.000000e+00 : f32
      %19 = vector.broadcast %cst : f32 to vector<2x128xf32>
      %20 = arith.select %18, %5, %19 : vector<2x128xi1>, vector<2x128xf32>
      %c0_7 = arith.constant 0 : index
      %c0_8 = arith.constant 0 : index
      %c0_9 = arith.constant 0 : index
      %21 = vector.load %arg3[%c0_7, %c0_8, %c0_9] : memref<1x2x128xf32, #tpu.memory_space<vmem>>, vector<1x1x128xf32>
      %cst_10 = arith.constant dense<0.000000e+00> : vector<128xf32>
      %22 = vector.multi_reduction <add>, %20, %cst_10 [0] : vector<2x128xf32> to vector<128xf32>
      %23 = vector.shape_cast %22 : vector<128xf32> to vector<1x128xf32>
      %24 = vector.shape_cast %23 : vector<1x128xf32> to vector<1x1x128xf32>
      %25 = arith.addf %21, %24 : vector<1x1x128xf32>
      %c0_11 = arith.constant 0 : index
      %c0_12 = arith.constant 0 : index
      %c0_13 = arith.constant 0 : index
      %26 = vector.load %arg3[%c0_11, %c0_12, %c0_13] : memref<1x2x128xf32, #tpu.memory_space<vmem>>, vector<1x1x128xf32>
      tpu.vector_store %arg3[%c0_11, %c0_12, %c0_13], %25 {strides = array<i32>} : memref<1x2x128xf32, #tpu.memory_space<vmem>>, vector<1x1x128xf32>,
      %c0_14 = arith.constant 0 : index
      %c1 = arith.constant 1 : index
      %c0_15 = arith.constant 0 : index
      %27 = vector.load %arg3[%c0_14, %c1, %c0_15] : memref<1x2x128xf32, #tpu.memory_space<vmem>>, vector<1x1x128xf32>
      %28 = arith.mulf %20, %20 : vector<2x128xf32>
      %cst_16 = arith.constant dense<0.000000e+00> : vector<128xf32>
      %29 = vector.multi_reduction <add>, %28, %cst_16 [0] : vector<2x128xf32> to vector<128xf32>
      %30 = vector.shape_cast %29 : vector<128xf32> to vector<1x128xf32>
      %31 = vector.shape_cast %30 : vector<1x128xf32> to vector<1x1x128xf32>
      %32 = arith.addf %27, %31 : vector<1x1x128xf32>
      %c0_17 = arith.constant 0 : index
      %c1_18 = arith.constant 1 : index
      %c0_19 = arith.constant 0 : index
      %33 = vector.load %arg3[%c0_17, %c1_18, %c0_19] : memref<1x2x128xf32, #tpu.memory_space<vmem>>, vector<1x1x128xf32>
      tpu.vector_store %arg3[%c0_17, %c1_18, %c0_19], %32 {strides = array<i32>} : memref<1x2x128xf32, #tpu.memory_space<vmem>>, vector<1x1x128xf32>,
    } else {
    }
    return
  }
  func.func @transform_0(%arg0: i32, %arg1: i32) -> (i32, i32) {
    %c1_i32 = arith.constant 1 : i32
    %0 = arith.muli %arg0, %c1_i32 : i32
    %1 = arith.addi %0, %arg1 : i32
    %c0_i32 = arith.constant 0 : i32
    %2 = arith.minsi %1, %c0_i32 : i32
    %c0_i32_0 = arith.constant 0 : i32
    %c0_i32_1 = arith.constant 0 : i32
    return %2, %c0_i32_0 : i32, i32
  }
  func.func @transform_1(%arg0: i32, %arg1: i32) -> (i32, i32, i32) {
    %c0_i32 = arith.constant 0 : i32
    %c0_i32_0 = arith.constant 0 : i32
    %c0_i32_1 = arith.constant 0 : i32
    return %arg0, %c0_i32, %c0_i32_0 : i32, i32, i32
  }
}

</mosaic_0001>

<bundles_post_ra>
// kernel: tpu_custom_call.1
= control target key start
LH: loop header
LB: loop body
LE: loop exit
PB: predicated region body
PF: predicated region fallthrough
CT: control target
= control target key end

     0   :  { %6 = vsyncpa [#allocation3], 0  ;;  %s205_s0 = inlined_call_operand.hbm [shape: f32[2,128], index: 0, kind: input, shape index: {}]   ;;  %s206_s1 = inlined_call_operand.hbm [shape: f32[1,2,128], index: 1, kind: output, shape index: {}]  }
   0x1   :  { %7 = vsyncpa [#allocation4], 0  ;;  %s168_s6 = smov [#allocation2]   ;;  %s120_s10 = scalar_lea.hbm %s205_s0, 32 }
   0x2   :  { %s19_s7 = sshll.u32 %s168_s6, 4  ;;  %p121_p0 = scmp.ne.s32.totalorder %s205_s0, %s120_s10  ;;  %s20_s7 = int_to_ptr.vmem [resolvable:$true] %s19_s7 }
   0x3   :  { %p124_p1 = scmp.lt.u32.totalorder %s120_s10, %s205_s0 }
   0x5   :  { %p126_p2 = pnand %p124_p1, %p121_p0 }
   0x7   :  { %129 = shalt.err (!%p126_p2)
}
   0x8   :  { %s130_s15 = scalar_lea.vmem %s20_s7, 32  ;;  %p135_p4 = scmp.lt.s32.totalorder %s20_s7, %s20_s7 }
   0x9   :  { %p131_p3 = scmp.ne.s32.totalorder %s20_s7, %s130_s15  ;;  %p136_p5 = scmp.lt.s32.totalorder %s130_s15, %s130_s15 }
   0xb   :  { %p137_p6 = por %p136_p5, %p135_p4 }
   0xd   :  { %p138_p7 = pnand %p137_p6, %p131_p3 }
   0xf   :  { %141 = shalt.err (!%p138_p7)
}
  0x10   :  { %22 = dma.hbm_to_vmem [thread:$0]  %s205_s0, 32, %s20_s7, [#allocation3]  }
  0x11   :  { %164 = dma.done.wait [#allocation3], 32  }
  0x12   :  { %165 = vsyncadd [#allocation3], 4294967264  ;;  %v169_v0 = vmov 0.0   ;;  %v34_v1 = vld [vmem:[#allocation2] sm:$0x3]  ;;  %vm46_vm0 = vcmask 1041408  }
  0x13   :  { %33 = vst [vmem:[#allocation5] sm:$0x3] %v169_v0  ;;  %v35_v2 = vand.u32 2147483647, %v34_v1  ;;  %s170_s0 = smov [#allocation5]  }
  0x14   :  { %s104_s18 = sshll.u32 %s170_s0, 4  ;;  %s105_s18 = int_to_ptr.vmem [resolvable:$true] %s104_s18 }
  0x15   :  { %118 = vlog2.f32 %v35_v2  ;;  %s142_s19 = scalar_lea.vmem %s105_s18, 32  ;;  %p147_p9 = scmp.lt.s32.totalorder %s105_s18, %s105_s18 }
  0x16   :  { %p143_p8 = scmp.ne.s32.totalorder %s105_s18, %s142_s19  ;;  %p148_p10 = scmp.lt.s32.totalorder %s142_s19, %s142_s19 }
  0x18   :  { %p149_p11 = por %p148_p10, %p147_p9 }
  0x1a   :  { %v45_v17 = vld [vmem:[#allocation5] sm:$0x1]  ;;  %v56_v20 = vld [vmem:[#allocation5 + $0x1] sm:$0x1]  ;;  %p150_p12 = pnand %p149_p11, %p143_p8 }
  0x1f   :  { %v119_v3 = vpop.eup %118 }
  0x20   :  { %v37_v4 = vmul.f32 0.6931472, %v119_v3 }
  0x22   :  { %v47_v5 = vsel %vm46_vm0, %v37_v4, 0.0  ;;  %v57_v6 = vmul.f32 %v37_v4, %v37_v4 }
  0x23   :  { %v48_v7 = vrot.slane %v47_v5, 4 }
  0x24   :  { %v58_v8 = vsel %vm46_vm0, %v57_v6, 0.0 }
  0x25   :  { %v49_v9 = vadd.f32 %v48_v7, %v47_v5  ;;  %v59_v10 = vrot.slane %v58_v8, 4 }
  0x27   :  { %v50_v11 = vrot.slane %v49_v9, 2  ;;  %v60_v12 = vadd.f32 %v59_v10, %v58_v8 }
  0x29   :  { %v51_v13 = vadd.f32 %v50_v11, %v49_v9  ;;  %v61_v14 = vrot.slane %v60_v12, 2 }
  0x2b   :  { %v52_v15 = vrot.slane %v51_v13, 1  ;;  %v62_v16 = vadd.f32 %v61_v14, %v60_v12 }
  0x2d   :  { %v53_v18 = vadd.f32 %v52_v15, %v51_v13  ;;  %v63_v19 = vrot.slane %v62_v16, 1 }
  0x2f   :  { %v54_v21 = vadd.f32 %v53_v18, %v45_v17  ;;  %v64_v22 = vadd.f32 %v63_v19, %v62_v16 }
  0x31   :  { %55 = vst [vmem:[#allocation5] sm:$0x1] %v54_v21  ;;  %v65_v23 = vadd.f32 %v64_v22, %v56_v20 }
  0x33   :  { %66 = vst [vmem:[#allocation5 + $0x1] sm:$0x1] %v65_v23 }
  0x34   :  { %153 = shalt.err (!%p150_p12)
}
  0x35   :  { %s154_s22 = scalar_lea.hbm %s206_s1, 32 }
  0x36   :  { %p155_p13 = scmp.ne.s32.totalorder %s206_s1, %s154_s22  ;;  %p158_p0 = scmp.lt.u32.totalorder %s154_s22, %s206_s1 }
  0x38   :  { %p160_p1 = pnand %p158_p0, %p155_p13 }
  0x3a   :  { %163 = shalt.err (!%p160_p1)
}
  0x3b   :  { %107 = dma.vmem_to_hbm [thread:$0]  %s105_s18, 32, %s206_s1, [#allocation4]  }
  0x3c   :  { %166 = dma.done.wait [#allocation4], 32  }
  0x3d   :  { %167 = vsyncadd [#allocation4], 4294967264 }
  0x3e   :  { %111 = vsyncpa [#allocation3], 1 }
  0x3f   :  { %112 = vsyncpa [#allocation4], 1 }

</bundles_post_ra>
